<compile_context>
chip_gen: v7x
topology: tpu7x:2x2x1
jax: 0.10.0
libtpu: 0.0.40
codegen_flags: <defaults>
</compile_context>

<pallas_src>
import jax
import jax.numpy as jnp
from jax.experimental import pallas as pl
from jax.experimental.pallas import tpu as pltpu


# ----------------------------------------------------------------------------
# Pallas kernel
# ----------------------------------------------------------------------------
def _upconv_kernel(x_ref, uw_ref, kt_ref, b_ref, o_ref, xw_ref):
    """x_ref : (nb, W, Cin*H)   f32  activations (W on sublanes, Cin*H on lanes)
    uw_ref: (3, 2W, W)        f32  dx-shifted, zero-padded W-interp matrices
    kt_ref: (3*Cin*H, TR)     bf16 folded H-interp + ky taps + channel mix + BN
    b_ref : (1, TR)           f32  folded conv bias + BN shift
    o_ref : (nb, 2W, TR)      f32  lane dim = Cout*2H tile -> unmasked stores
    xw_ref: (nb*2W, 3*Cin*H)  f32  scratch: dx taps concatenated on contraction
    """
    nb, _, CH = x_ref.shape
    Wo = uw_ref.shape[1]

    # ---- stage 1: bilinear W-interp (+ conv W zero-pad + dx shift), per image
    for b in range(nb):                                   # static unroll
        xT = x_ref[b]                                      # (W, Cin*H)
        for dx in range(3):                                # static unroll
            xw = jnp.dot(uw_ref[dx], xT,
                         preferred_element_type=jnp.float32)   # (2W, Cin*H)
            xw_ref[b * Wo:(b + 1) * Wo, dx * CH:(dx + 1) * CH] = xw

    # ---- stage 2: single lane-dense MXU matmul, contraction = 3*Cin*H -------
    acc = jnp.dot(xw_ref[...].astype(kt_ref.dtype), kt_ref[...],
                  preferred_element_type=jnp.float32)      # (nb*2W, TR)
    acc = jnp.maximum(acc + b_ref[...], 0.0)               # bias + ReLU

    for b in range(nb):                                    # static unroll
        o_ref[b] = acc[b * Wo:(b + 1) * Wo, :].astype(o_ref.dtype)


# ----------------------------------------------------------------------------
# Wrapper
# ----------------------------------------------------------------------------
def _interp_matrix(n_in, n_out):
    """(n_out, n_in) bilinear interpolation matrix, align_corners=True
    (matches nn.Upsample(scale_factor=2, mode='bilinear', align_corners=True))."""
    i = jnp.arange(n_out, dtype=jnp.float32)
    denom = max(n_out - 1, 1)
    src = i * (n_in - 1) / denom
    i0 = jnp.clip(jnp.floor(src), 0, n_in - 1).astype(jnp.int32)
    i1 = jnp.minimum(i0 + 1, n_in - 1)
    frac = src - i0.astype(jnp.float32)
    m = jnp.zeros((n_out, n_in), jnp.float32)
    m = m.at[jnp.arange(n_out), i0].add(1.0 - frac)
    m = m.at[jnp.arange(n_out), i1].add(frac)
    return m


@jax.jit
def upconv_forward(x, conv_w, conv_b, gamma, beta, run_mean, run_var):
    """UpConv forward.  x:(B,Cin,H,W) NCHW -> (B,Cout,2H,2W) NCHW."""
    eps = 1e-5
    B, C, H, W = x.shape
    Cout = conv_w.shape[0]
    Ho, Wo = 2 * H, 2 * W
    CH = C * H
    NR = Cout * Ho                                # output "row" dim -> lanes
    hp = jax.lax.Precision.HIGHEST

    # ---- fold BatchNorm (inference) + conv bias into scale / bias ----------
    s = gamma * jax.lax.rsqrt(run_var + eps)                   # (Cout,)
    bias_f = beta + (conv_b - run_mean) * s                    # (Cout,)
    wf = conv_w * s[:, None, None, None]                       # (Cout,Cin,3,3)

    # ---- align_corners=True interp matrices, zero-padded for the conv ------
    uhp = jnp.pad(_interp_matrix(H, Ho), ((1, 1), (0, 0)))     # (2H+2, H)
    uwp = jnp.pad(_interp_matrix(W, Wo), ((1, 1), (0, 0)))     # (2W+2, W)
    uw3 = jnp.stack([uwp[dx:dx + Wo] for dx in range(3)])      # (3, 2W, W)
    a3 = jnp.stack([uhp[dy:dy + Ho] for dy in range(3)])       # (3, 2H, H)

    # KT[(dx,c,h),(o,p)] = sum_dy wf[o,c,dy,dx] * a3[dy,p,h]  -> bf16 for MXU
    kt = jnp.einsum("ocyx,yph->xchop", wf, a3, precision=hp)   # (3,C,H,Cout,2H)
    kt = kt.reshape(3 * CH, NR).astype(jnp.bfloat16)

    bias_row = jnp.repeat(bias_f, Ho)[None, :]                 # (1, Cout*2H)

    # activations: one cheap XLA transpose so Cin*H sits on the lane axis
    xT = jnp.transpose(x, (0, 3, 1, 2)).reshape(B, W, CH)      # (B, W, Cin*H)

    # ---- tiling -------------------------------------------------------------
    # Tile the Cout*2H (lane) axis to bound the KT block in VMEM and to give
    # the v7x megacore parallel steps; fuse images per step so single-TC chips
    # amortize per-grid-step overhead and the MXU sees >= nb*2W rows.
    TR = 512 if (NR > 512 and NR % 512 == 0) else NR
    R = NR // TR
    nb = 1
    for cand in range(B, 0, -1):
        if B % cand == 0 and cand * Wo <= 256:
            nb = cand
            break
    NB = B // nb

    flops = (B * R * 3 * 2 * Wo * W * CH            # stage 1 (redone per row blk)
             + B * 2 * Wo * (3 * CH) * NR)          # stage 2 (dominant)
    bytes_accessed = (4 * B * W * CH * R + 4 * 3 * Wo * W
                      + 2 * (3 * CH) * NR + 4 * NR + 4 * B * Wo * NR)

    out_t = pl.pallas_call(
        _upconv_kernel,
        out_shape=jax.ShapeDtypeStruct((B, Wo, NR), x.dtype),
        grid_spec=pltpu.PrefetchScalarGridSpec(
            num_scalar_prefetch=0,
            grid=(R, NB),                            # batch innermost: KT/bias
            in_specs=[                               # blocks re-used across b
                pl.BlockSpec((nb, W, CH), lambda r, b: (b, 0, 0)),
                pl.BlockSpec((3, Wo, W), lambda r, b: (0, 0, 0)),
                pl.BlockSpec((3 * CH, TR), lambda r, b: (0, r)),
                pl.BlockSpec((1, TR), lambda r, b: (0, r)),
            ],
            out_specs=pl.BlockSpec((nb, Wo, TR), lambda r, b: (b, 0, r)),
            scratch_shapes=[pltpu.VMEM((nb * Wo, 3 * CH), jnp.float32)],
        ),
        compiler_params=pltpu.CompilerParams(
            dimension_semantics=("parallel", "parallel"),
            vmem_limit_bytes=32 * 1024 * 1024,
        ),
        cost_estimate=pl.CostEstimate(
            flops=flops, transcendentals=0, bytes_accessed=bytes_accessed),
    )(xT, uw3, kt, bias_row)

    # (B, 2W, Cout*2H) -> (B, Cout, 2H, 2W): one cheap XLA output transpose.
    return out_t.reshape(B, Wo, Cout, Ho).transpose(0, 2, 3, 1)


# ----------------------------------------------------------------------------
# Pure-JAX reference (independent code path) for the self-check
# ----------------------------------------------------------------------------
def _reference(x, conv_w, conv_b, gamma, beta, run_mean, run_var, eps=1e-5):
    B, C, H, W = x.shape

    def coords(n_in, n_out):
        i = jnp.arange(n_out, dtype=jnp.float32)
        src = i * (n_in - 1) / max(n_out - 1, 1)
        i0 = jnp.floor(src).astype(jnp.int32)
        i1 = jnp.minimum(i0 + 1, n_in - 1)
        return i0, i1, src - i0.astype(jnp.float32)

    i0, i1, fh = coords(H, 2 * H)
    j0, j1, fw = coords(W, 2 * W)
    xh = x[:, :, i0, :] * (1.0 - fh)[:, None] + x[:, :, i1, :] * fh[:, None]
    u = xh[:, :, :, j0] * (1.0 - fw) + xh[:, :, :, j1] * fw    # bilinear, a_c=True

    y = jax.lax.conv_general_dilated(
        u, conv_w, window_strides=(1, 1), padding=((1, 1), (1, 1)),
        dimension_numbers=("NCHW", "OIHW", "NCHW"),
        precision=jax.lax.Precision.HIGHEST)
    y = y + conv_b[None, :, None, None]
    s = gamma / jnp.sqrt(run_var + eps)
    y = y * s[None, :, None, None] + (beta - run_mean * s)[None, :, None, None]
    return jnp.maximum(y, 0.0)


if __name__ == "__main__":
    B, Cin, H, W = 2, 4, 16, 16
    Cout = 32

    key = jax.random.PRNGKey(0)
    k1, k2, k3, k4, k5, k6 = jax.random.split(key, 6)

    x = jax.random.normal(k1, (B, Cin, H, W), dtype=jnp.float32)
    bound = 1.0 / (Cin * 9) ** 0.5
    conv_w = jax.random.uniform(k2, (Cout, Cin, 3, 3), jnp.float32, -bound, bound)
    conv_b = jax.random.uniform(k3, (Cout,), jnp.float32, -bound, bound)
    gamma = jax.random.uniform(k4, (Cout,), jnp.float32, 0.5, 1.5)
    beta = jax.random.uniform(k5, (Cout,), jnp.float32, -0.5, 0.5)
    run_mean = jax.random.uniform(k6, (Cout,), jnp.float32, -0.5, 0.5)
    run_var = jnp.linspace(0.5, 1.5, Cout).astype(jnp.float32)

    out = upconv_forward(x, conv_w, conv_b, gamma, beta, run_mean, run_var)
    out = jax.block_until_ready(out)
    assert out.shape == (B, Cout, 2 * H, 2 * W), out.shape

    ref = _reference(x, conv_w, conv_b, gamma, beta, run_mean, run_var)
    max_err = float(jnp.max(jnp.abs(out - ref)))
    assert jnp.allclose(out, ref, atol=2e-2, rtol=2e-2), max_err

    print("KERNEL_OK")
</pallas_src>

<mosaic_0001>
module attributes {stable_mosaic.version = 11 : i64} {
  func.func private @main(%arg0: i32) attributes {dimension_semantics = [#tpu.dimension_semantics<core_parallel>], iteration_bounds = array<i64: 2>, tpu.core_type = #tpu.core_type<sc_scalar_subcore>, window_params = []} {
    return
  }
}

module attributes {stable_mosaic.version = 11 : i64} {
  func.func private @main(%arg0: i32) attributes {dimension_semantics = [#tpu.dimension_semantics<core_parallel>], iteration_bounds = array<i64: 2>, tpu.core_type = #tpu.core_type<sc_scalar_subcore>, window_params = []} {
    return
  }
}

module attributes {stable_mosaic.version = 11 : i64} {
  func.func @_upconv_kernel(%arg0: i32, %arg1: i32, %arg2: memref<2x16x64xf32, #tpu.memory_space<vmem>>, %arg3: memref<3x32x16xf32, #tpu.memory_space<vmem>>, %arg4: memref<192x512xbf16, #tpu.memory_space<vmem>>, %arg5: memref<1x512xf32, #tpu.memory_space<vmem>>, %arg6: memref<2x32x512xf32, #tpu.memory_space<vmem>>, %arg7: memref<64x192xf32, #tpu.memory_space<vmem>>) attributes {dimension_semantics = [#tpu.dimension_semantics<parallel>, #tpu.dimension_semantics<parallel>], iteration_bounds = array<i64: 2, 1>, scalar_prefetch = 0 : i64, scratch_operands = 1 : i64, tpu.core_type = #tpu.core_type<tc>, window_params = [{transform_indices = @transform_0, window_bounds = array<i64: 2, 16, 64>}, {pipeline_mode = #tpu.pipeline_mode<synchronous>, transform_indices = @transform_1, window_bounds = array<i64: 3, 32, 16>}, {transform_indices = @transform_2, window_bounds = array<i64: 192, 512>}, {transform_indices = @transform_3, window_bounds = array<i64: 1, 512>}, {transform_indices = @transform_4, window_bounds = array<i64: 2, 32, 512>}]} {
    %c0 = arith.constant 0 : index
    %c0_0 = arith.constant 0 : index
    %c0_1 = arith.constant 0 : index
    %0 = vector.load %arg2[%c0, %c0_0, %c0_1] : memref<2x16x64xf32, #tpu.memory_space<vmem>>, vector<1x16x64xf32>
    %1 = vector.shape_cast %0 : vector<1x16x64xf32> to vector<16x64xf32>
    %c0_2 = arith.constant 0 : index
    %c0_3 = arith.constant 0 : index
    %c0_4 = arith.constant 0 : index
    %2 = vector.load %arg3[%c0_2, %c0_3, %c0_4] : memref<3x32x16xf32, #tpu.memory_space<vmem>>, vector<1x32x16xf32>
    %3 = vector.shape_cast %2 : vector<1x32x16xf32> to vector<32x16xf32>
    %cst = arith.constant dense<0.000000e+00> : vector<32x64xf32>
    %4 = tpu.matmul %3, %1, %cst {dimension_numbers = #tpu.dot_dimension_numbers<[1], [0], [0], [1], [0, 0, 1, 1], [], []>} : vector<32x16xf32>, vector<16x64xf32>, vector<32x64xf32> -> vector<32x64xf32>
    %c0_5 = arith.constant 0 : index
    %c0_6 = arith.constant 0 : index
    %5 = vector.load %arg7[%c0_5, %c0_6] : memref<64x192xf32, #tpu.memory_space<vmem>>, vector<32x64xf32>
    tpu.vector_store %arg7[%c0_5, %c0_6], %4 {strides = array<i32>} : memref<64x192xf32, #tpu.memory_space<vmem>>, vector<32x64xf32>,
    %c1 = arith.constant 1 : index
    %c0_7 = arith.constant 0 : index
    %c0_8 = arith.constant 0 : index
    %6 = vector.load %arg3[%c1, %c0_7, %c0_8] : memref<3x32x16xf32, #tpu.memory_space<vmem>>, vector<1x32x16xf32>
    %7 = vector.shape_cast %6 : vector<1x32x16xf32> to vector<32x16xf32>
    %cst_9 = arith.constant dense<0.000000e+00> : vector<32x64xf32>
    %8 = tpu.matmul %7, %1, %cst_9 {dimension_numbers = #tpu.dot_dimension_numbers<[1], [0], [0], [1], [0, 0, 1, 1], [], []>} : vector<32x16xf32>, vector<16x64xf32>, vector<32x64xf32> -> vector<32x64xf32>
    %c0_10 = arith.constant 0 : index
    %c64 = arith.constant 64 : index
    %9 = vector.load %arg7[%c0_10, %c64] : memref<64x192xf32, #tpu.memory_space<vmem>>, vector<32x64xf32>
    tpu.vector_store %arg7[%c0_10, %c64], %8 {strides = array<i32>} : memref<64x192xf32, #tpu.memory_space<vmem>>, vector<32x64xf32>,
    %c2 = arith.constant 2 : index
    %c0_11 = arith.constant 0 : index
    %c0_12 = arith.constant 0 : index
    %10 = vector.load %arg3[%c2, %c0_11, %c0_12] : memref<3x32x16xf32, #tpu.memory_space<vmem>>, vector<1x32x16xf32>
    %11 = vector.shape_cast %10 : vector<1x32x16xf32> to vector<32x16xf32>
    %cst_13 = arith.constant dense<0.000000e+00> : vector<32x64xf32>
    %12 = tpu.matmul %11, %1, %cst_13 {dimension_numbers = #tpu.dot_dimension_numbers<[1], [0], [0], [1], [0, 0, 1, 1], [], []>} : vector<32x16xf32>, vector<16x64xf32>, vector<32x64xf32> -> vector<32x64xf32>
    %c0_14 = arith.constant 0 : index
    %c128 = arith.constant 128 : index
    %13 = vector.load %arg7[%c0_14, %c128] : memref<64x192xf32, #tpu.memory_space<vmem>>, vector<32x64xf32>
    tpu.vector_store %arg7[%c0_14, %c128], %12 {strides = array<i32>} : memref<64x192xf32, #tpu.memory_space<vmem>>, vector<32x64xf32>,
    %c1_15 = arith.constant 1 : index
    %c0_16 = arith.constant 0 : index
    %c0_17 = arith.constant 0 : index
    %14 = vector.load %arg2[%c1_15, %c0_16, %c0_17] : memref<2x16x64xf32, #tpu.memory_space<vmem>>, vector<1x16x64xf32>
    %15 = vector.shape_cast %14 : vector<1x16x64xf32> to vector<16x64xf32>
    %c0_18 = arith.constant 0 : index
    %c0_19 = arith.constant 0 : index
    %c0_20 = arith.constant 0 : index
    %16 = vector.load %arg3[%c0_18, %c0_19, %c0_20] : memref<3x32x16xf32, #tpu.memory_space<vmem>>, vector<1x32x16xf32>
    %17 = vector.shape_cast %16 : vector<1x32x16xf32> to vector<32x16xf32>
    %cst_21 = arith.constant dense<0.000000e+00> : vector<32x64xf32>
    %18 = tpu.matmul %17, %15, %cst_21 {dimension_numbers = #tpu.dot_dimension_numbers<[1], [0], [0], [1], [0, 0, 1, 1], [], []>} : vector<32x16xf32>, vector<16x64xf32>, vector<32x64xf32> -> vector<32x64xf32>
    %c32 = arith.constant 32 : index
    %c0_22 = arith.constant 0 : index
    %19 = vector.load %arg7[%c32, %c0_22] : memref<64x192xf32, #tpu.memory_space<vmem>>, vector<32x64xf32>
    tpu.vector_store %arg7[%c32, %c0_22], %18 {strides = array<i32>} : memref<64x192xf32, #tpu.memory_space<vmem>>, vector<32x64xf32>,
    %c1_23 = arith.constant 1 : index
    %c0_24 = arith.constant 0 : index
    %c0_25 = arith.constant 0 : index
    %20 = vector.load %arg3[%c1_23, %c0_24, %c0_25] : memref<3x32x16xf32, #tpu.memory_space<vmem>>, vector<1x32x16xf32>
    %21 = vector.shape_cast %20 : vector<1x32x16xf32> to vector<32x16xf32>
    %cst_26 = arith.constant dense<0.000000e+00> : vector<32x64xf32>
    %22 = tpu.matmul %21, %15, %cst_26 {dimension_numbers = #tpu.dot_dimension_numbers<[1], [0], [0], [1], [0, 0, 1, 1], [], []>} : vector<32x16xf32>, vector<16x64xf32>, vector<32x64xf32> -> vector<32x64xf32>
    %c32_27 = arith.constant 32 : index
    %c64_28 = arith.constant 64 : index
    %23 = vector.load %arg7[%c32_27, %c64_28] : memref<64x192xf32, #tpu.memory_space<vmem>>, vector<32x64xf32>
    tpu.vector_store %arg7[%c32_27, %c64_28], %22 {strides = array<i32>} : memref<64x192xf32, #tpu.memory_space<vmem>>, vector<32x64xf32>,
    %c2_29 = arith.constant 2 : index
    %c0_30 = arith.constant 0 : index
    %c0_31 = arith.constant 0 : index
    %24 = vector.load %arg3[%c2_29, %c0_30, %c0_31] : memref<3x32x16xf32, #tpu.memory_space<vmem>>, vector<1x32x16xf32>
    %25 = vector.shape_cast %24 : vector<1x32x16xf32> to vector<32x16xf32>
    %cst_32 = arith.constant dense<0.000000e+00> : vector<32x64xf32>
    %26 = tpu.matmul %25, %15, %cst_32 {dimension_numbers = #tpu.dot_dimension_numbers<[1], [0], [0], [1], [0, 0, 1, 1], [], []>} : vector<32x16xf32>, vector<16x64xf32>, vector<32x64xf32> -> vector<32x64xf32>
    %c32_33 = arith.constant 32 : index
    %c128_34 = arith.constant 128 : index
    %27 = vector.load %arg7[%c32_33, %c128_34] : memref<64x192xf32, #tpu.memory_space<vmem>>, vector<32x64xf32>
    tpu.vector_store %arg7[%c32_33, %c128_34], %26 {strides = array<i32>} : memref<64x192xf32, #tpu.memory_space<vmem>>, vector<32x64xf32>,
    %c0_35 = arith.constant 0 : index
    %c0_36 = arith.constant 0 : index
    %28 = vector.load %arg7[%c0_35, %c0_36] : memref<64x192xf32, #tpu.memory_space<vmem>>, vector<64x192xf32>
    %29 = arith.truncf %28 : vector<64x192xf32> to vector<64x192xbf16>
    %c0_37 = arith.constant 0 : index
    %c0_38 = arith.constant 0 : index
    %30 = vector.load %arg4[%c0_37, %c0_38] : memref<192x512xbf16, #tpu.memory_space<vmem>>, vector<192x512xbf16>
    %cst_39 = arith.constant dense<0.000000e+00> : vector<64x512xf32>
    %31 = tpu.matmul %29, %30, %cst_39 {dimension_numbers = #tpu.dot_dimension_numbers<[1], [0], [0], [1], [0, 0, 1, 1], [], []>} : vector<64x192xbf16>, vector<192x512xbf16>, vector<64x512xf32> -> vector<64x512xf32>
    %c0_40 = arith.constant 0 : index
    %c0_41 = arith.constant 0 : index
    %32 = vector.load %arg5[%c0_40, %c0_41] : memref<1x512xf32, #tpu.memory_space<vmem>>, vector<1x512xf32>
    %33 = vector.broadcast %32 : vector<1x512xf32> to vector<64x512xf32>
    %34 = arith.addf %31, %33 : vector<64x512xf32>
    %cst_42 = arith.constant 0.000000e+00 : f32
    %35 = vector.broadcast %cst_42 : f32 to vector<64x512xf32>
    %36 = arith.maximumf %34, %35 : vector<64x512xf32>
    %37 = vector.extract_strided_slice %36 {offsets = [0, 0], sizes = [32, 512], strides = [1, 1]} : vector<64x512xf32> to vector<32x512xf32>
    %c0_43 = arith.constant 0 : index
    %c0_44 = arith.constant 0 : index
    %c0_45 = arith.constant 0 : index
    %38 = vector.load %arg6[%c0_43, %c0_44, %c0_45] : memref<2x32x512xf32, #tpu.memory_space<vmem>>, vector<1x32x512xf32>
    %39 = vector.shape_cast %38 : vector<1x32x512xf32> to vector<32x512xf32>
    %40 = vector.shape_cast %37 : vector<32x512xf32> to vector<1x32x512xf32>
    tpu.vector_store %arg6[%c0_43, %c0_44, %c0_45], %40 {strides = array<i32>} : memref<2x32x512xf32, #tpu.memory_space<vmem>>, vector<1x32x512xf32>,
    %41 = vector.extract_strided_slice %36 {offsets = [32, 0], sizes = [32, 512], strides = [1, 1]} : vector<64x512xf32> to vector<32x512xf32>
    %c1_46 = arith.constant 1 : index
    %c0_47 = arith.constant 0 : index
    %c0_48 = arith.constant 0 : index
    %42 = vector.load %arg6[%c1_46, %c0_47, %c0_48] : memref<2x32x512xf32, #tpu.memory_space<vmem>>, vector<1x32x512xf32>
    %43 = vector.shape_cast %42 : vector<1x32x512xf32> to vector<32x512xf32>
    %44 = vector.shape_cast %41 : vector<32x512xf32> to vector<1x32x512xf32>
    tpu.vector_store %arg6[%c1_46, %c0_47, %c0_48], %44 {strides = array<i32>} : memref<2x32x512xf32, #tpu.memory_space<vmem>>, vector<1x32x512xf32>,
    return
  }
  func.func @transform_0(%arg0: i32, %arg1: i32) -> (i32, i32, i32) {
    %c0_i32 = arith.constant 0 : i32
    %c0_i32_0 = arith.constant 0 : i32
    %c0_i32_1 = arith.constant 0 : i32
    return %arg1, %c0_i32, %c0_i32_0 : i32, i32, i32
  }
  func.func @transform_1(%arg0: i32, %arg1: i32) -> (i32, i32, i32) {
    %c0_i32 = arith.constant 0 : i32
    %c0_i32_0 = arith.constant 0 : i32
    %c0_i32_1 = arith.constant 0 : i32
    %c0_i32_2 = arith.constant 0 : i32
    return %c0_i32, %c0_i32_0, %c0_i32_1 : i32, i32, i32
  }
  func.func @transform_2(%arg0: i32, %arg1: i32) -> (i32, i32) {
    %c0_i32 = arith.constant 0 : i32
    %c0_i32_0 = arith.constant 0 : i32
    return %c0_i32, %arg0 : i32, i32
  }
  func.func @transform_3(%arg0: i32, %arg1: i32) -> (i32, i32) {
    %c0_i32 = arith.constant 0 : i32
    %c0_i32_0 = arith.constant 0 : i32
    return %c0_i32, %arg0 : i32, i32
  }
  func.func @transform_4(%arg0: i32, %arg1: i32) -> (i32, i32, i32) {
    %c0_i32 = arith.constant 0 : i32
    %c0_i32_0 = arith.constant 0 : i32
    return %arg1, %c0_i32, %arg0 : i32, i32, i32
  }
}

</mosaic_0001>

<bundles_post_ra>
// kernel: upconv_forward.1
= control target key start
LH: loop header
LB: loop body
LE: loop exit
PB: predicated region body
PF: predicated region fallthrough
CT: control target
= control target key end

     0   :  { %s2213_s15 = smov 0   ;;  %s2215_s16 = smov 0   ;;  %s2695_s0 = inlined_call_operand.vmem [shape: f32[2,16,64], index: 0, kind: input, shape index: {}]   ;;  %s2696_s1 = inlined_call_operand.vmem [shape: f32[3,32,16], index: 1, kind: input, shape index: {}]   ;;  %s2697_s2 = inlined_call_operand.vmem [shape: bf16[192,1024], index: 2, kind: input, shape index: {}]   ;;  %s2698_s3 = inlined_call_operand.vmem [shape: f32[1,1024], index: 3, kind: input, shape index: {}]   ;;  %s2699_s4 = inlined_call_operand.vmem [shape: f32[2,32,1024], index: 4, kind: output, shape index: {}]  }
   0x1   :  { %s2217_s17 = smov 0   ;;  %s2219_s18 = smov 0  }
   0x2   :  { %s2221_s19 = smov 0  }
   0x3 LB: > { %s26_s20 = sadd.s32 1, %s2181_s18  ;;  %s1781_s21 = sadd.s32 4294967295, %s2185_s19   ;;  %s2185_s19 = sphi %s2221_s19, %s14_s19   ;;  %s2181_s18 = sphi %s2219_s18, %s2704_s18   ;;  %s2177_s17 = sphi %s2217_s17, %s2703_s17   ;;  %s2173_s16 = sphi %s2215_s16, %s2702_s16   ;;  %s2169_s15 = sphi %s2213_s15, %s2701_s15  }
   0x4   : > { %p28_p0 = scmp.ge.s32.totalorder %s26_s20, 2  ;;  %p87_p1 = scmp.ne.s32.totalorder %s2173_s16, %s2169_s15 }
   0x5   : > { %p88_p2 = scmp.eq.s32.totalorder %s2185_s19, 0  ;;  %p145_p4 = scmp.eq.s32.totalorder %s1781_s21, 1 }
   0x6   : > { %s2706_s20 = smov (%p28_p0, %s26_s20), 0  ;;  %s80_s23 = sadd.s32 1, %s2173_s16 }
   0x7   : > { %p89_p3 = por %p88_p2, %p87_p1  ;;  %s77_s22 = ssub.s32 %s2181_s18, %s2706_s20 }
   0x8   : > { %p78_p5 = scmp.eq.s32.totalorder %s77_s22, 0  ;;  %p2248_p6 = por %p145_p4, %p87_p1 }
   0x9   : > { %p1785_p7 = scmp.ge.s32.totalorder %s2185_s19, 2 }
   0xa   : > { %s2253_s25 = scalar_select %p78_p5, %s2173_s16, %s80_s23  }
   0xb   : > { %180 = sbr.rel (%p1785_p7) target bundleno = 46 (0x2e), region = 24 }
  0x12   : > { %183 = sbr.rel (!%p89_p3) target bundleno = 46 (0x2e), region = 28  ;;  %s185_s26 = sand.u32 (%p89_p3), 1, %s2173_s16  }
  0x13   : > { %s1910_s27 = sshll.u32 (%p89_p3), %s2181_s18, 4  ;;  %s2032_s28 = smul.u32 (%p89_p3), 384, %s185_s26 }
  0x14   : > { %s2261_s5 = scalar_lea.vmem (%p89_p3), %s2697_s2, %s1910_s27 }
  0x15   : > { %v203_v0 = vld [vmem:[%s2261_s5] sm:$0xff] (%p89_p3)  ;;  %v205_v1 = vld [vmem:[%s2261_s5 + $0x8] sm:$0xff] (%p89_p3)  ;;  %s2269_s6 = scalar_lea.vmem (%p89_p3), [#allocation3], %s2032_s28 }
  0x16   : > { %v207_v2 = vld [vmem:[%s2261_s5 + $0x20] sm:$0xff] (%p89_p3)  ;;  %v209_v3 = vld [vmem:[%s2261_s5 + $0x28] sm:$0xff] (%p89_p3)  ;;  %204 = vst [vmem:[%s2269_s6] sm:$0xff] (%p89_p3), %v203_v0  ;;  %206 = vst [vmem:[%s2269_s6 + $0x8] sm:$0xff] (%p89_p3), %v205_v1 }
  0x17   : > { %v211_v4 = vld [vmem:[%s2261_s5 + $0x40] sm:$0xff] (%p89_p3)  ;;  %v213_v5 = vld [vmem:[%s2261_s5 + $0x48] sm:$0xff] (%p89_p3)  ;;  %208 = vst [vmem:[%s2269_s6 + $0x10] sm:$0xff] (%p89_p3), %v207_v2  ;;  %210 = vst [vmem:[%s2269_s6 + $0x18] sm:$0xff] (%p89_p3), %v209_v3 }
  0x18   : > { %212 = vst [vmem:[%s2269_s6 + $0x20] sm:$0xff] (%p89_p3), %v211_v4  ;;  %214 = vst [vmem:[%s2269_s6 + $0x28] sm:$0xff] (%p89_p3), %v213_v5  ;;  %v215_v6 = vld [vmem:[%s2261_s5 + $0x60] sm:$0xff] (%p89_p3)  ;;  %v217_v7 = vld [vmem:[%s2261_s5 + $0x68] sm:$0xff] (%p89_p3) }
  0x19   : > { %v219_v8 = vld [vmem:[%s2261_s5 + $0x80] sm:$0xff]  ;;  %216 = vst [vmem:[%s2269_s6 + $0x30] sm:$0xff] %v215_v6  ;;  %218 = vst [vmem:[%s2269_s6 + $0x38] sm:$0xff] %v217_v7  ;;  %v221_v9 = vld [vmem:[%s2261_s5 + $0x88] sm:$0xff] }
  0x1a   : > { %220 = vst [vmem:[%s2269_s6 + $0x40] sm:$0xff] %v219_v8  ;;  %v223_v10 = vld [vmem:[%s2261_s5 + $0xa0] sm:$0xff]  ;;  %v225_v11 = vld [vmem:[%s2261_s5 + $0xa8] sm:$0xff]  ;;  %222 = vst [vmem:[%s2269_s6 + $0x48] sm:$0xff] %v221_v9 }
  0x1b   : > { %224 = vst [vmem:[%s2269_s6 + $0x50] sm:$0xff] %v223_v10  ;;  %226 = vst [vmem:[%s2269_s6 + $0x58] sm:$0xff] %v225_v11  ;;  %v227_v12 = vld [vmem:[%s2261_s5 + $0xc0] sm:$0xff]  ;;  %v229_v13 = vld [vmem:[%s2261_s5 + $0xc8] sm:$0xff] }
  0x1c   : > { %v231_v14 = vld [vmem:[%s2261_s5 + $0xe0] sm:$0xff]  ;;  %228 = vst [vmem:[%s2269_s6 + $0x60] sm:$0xff] %v227_v12  ;;  %230 = vst [vmem:[%s2269_s6 + $0x68] sm:$0xff] %v229_v13  ;;  %v233_v15 = vld [vmem:[%s2261_s5 + $0xe8] sm:$0xff] }
  0x1d   : > { %232 = vst [vmem:[%s2269_s6 + $0x70] sm:$0xff] %v231_v14  ;;  %v235_v16 = vld [vmem:[%s2261_s5 + $0x100] sm:$0xff]  ;;  %v237_v17 = vld [vmem:[%s2261_s5 + $0x108] sm:$0xff]  ;;  %234 = vst [vmem:[%s2269_s6 + $0x78] sm:$0xff] %v233_v15 }
  0x1e   : > { %236 = vst [vmem:[%s2269_s6 + $0x80] sm:$0xff] %v235_v16  ;;  %238 = vst [vmem:[%s2269_s6 + $0x88] sm:$0xff] %v237_v17  ;;  %v239_v18 = vld [vmem:[%s2261_s5 + $0x120] sm:$0xff]  ;;  %v241_v19 = vld [vmem:[%s2261_s5 + $0x128] sm:$0xff] }
  0x1f   : > { %v243_v20 = vld [vmem:[%s2261_s5 + $0x140] sm:$0xff]  ;;  %240 = vst [vmem:[%s2269_s6 + $0x90] sm:$0xff] %v239_v18  ;;  %242 = vst [vmem:[%s2269_s6 + $0x98] sm:$0xff] %v241_v19  ;;  %v245_v21 = vld [vmem:[%s2261_s5 + $0x148] sm:$0xff] }
  0x20   : > { %244 = vst [vmem:[%s2269_s6 + $0xa0] sm:$0xff] %v243_v20  ;;  %v247_v22 = vld [vmem:[%s2261_s5 + $0x160] sm:$0xff]  ;;  %v249_v23 = vld [vmem:[%s2261_s5 + $0x168] sm:$0xff]  ;;  %246 = vst [vmem:[%s2269_s6 + $0xa8] sm:$0xff] %v245_v21 }
  0x21   : > { %248 = vst [vmem:[%s2269_s6 + $0xb0] sm:$0xff] %v247_v22  ;;  %250 = vst [vmem:[%s2269_s6 + $0xb8] sm:$0xff] %v249_v23  ;;  %v251_v24 = vld [vmem:[%s2261_s5 + $0x180] sm:$0xff]  ;;  %v253_v25 = vld [vmem:[%s2261_s5 + $0x188] sm:$0xff] }
  0x22   : > { %v255_v26 = vld [vmem:[%s2261_s5 + $0x1a0] sm:$0xff]  ;;  %252 = vst [vmem:[%s2269_s6 + $0xc0] sm:$0xff] %v251_v24  ;;  %254 = vst [vmem:[%s2269_s6 + $0xc8] sm:$0xff] %v253_v25  ;;  %v257_v27 = vld [vmem:[%s2261_s5 + $0x1a8] sm:$0xff] }
  0x23   : > { %256 = vst [vmem:[%s2269_s6 + $0xd0] sm:$0xff] %v255_v26  ;;  %v259_v28 = vld [vmem:[%s2261_s5 + $0x1c0] sm:$0xff]  ;;  %v261_v29 = vld [vmem:[%s2261_s5 + $0x1c8] sm:$0xff]  ;;  %258 = vst [vmem:[%s2269_s6 + $0xd8] sm:$0xff] %v257_v27 }
  0x24   : > { %260 = vst [vmem:[%s2269_s6 + $0xe0] sm:$0xff] %v259_v28  ;;  %262 = vst [vmem:[%s2269_s6 + $0xe8] sm:$0xff] %v261_v29  ;;  %v263_v30 = vld [vmem:[%s2261_s5 + $0x1e0] sm:$0xff]  ;;  %v265_v31 = vld [vmem:[%s2261_s5 + $0x1e8] sm:$0xff] }
  0x25   : > { %v267_v32 = vld [vmem:[%s2261_s5 + $0x200] sm:$0xff]  ;;  %264 = vst [vmem:[%s2269_s6 + $0xf0] sm:$0xff] %v263_v30  ;;  %266 = vst [vmem:[%s2269_s6 + $0xf8] sm:$0xff] %v265_v31  ;;  %v269_v33 = vld [vmem:[%s2261_s5 + $0x208] sm:$0xff] }
  0x26   : > { %268 = vst [vmem:[%s2269_s6 + $0x100] sm:$0xff] %v267_v32  ;;  %v271_v34 = vld [vmem:[%s2261_s5 + $0x220] sm:$0xff]  ;;  %v273_v35 = vld [vmem:[%s2261_s5 + $0x228] sm:$0xff]  ;;  %270 = vst [vmem:[%s2269_s6 + $0x108] sm:$0xff] %v269_v33 }
  0x27   : > { %272 = vst [vmem:[%s2269_s6 + $0x110] sm:$0xff] %v271_v34  ;;  %274 = vst [vmem:[%s2269_s6 + $0x118] sm:$0xff] %v273_v35  ;;  %v275_v36 = vld [vmem:[%s2261_s5 + $0x240] sm:$0xff]  ;;  %v277_v37 = vld [vmem:[%s2261_s5 + $0x248] sm:$0xff] }
  0x28   : > { %v279_v38 = vld [vmem:[%s2261_s5 + $0x260] sm:$0xff]  ;;  %276 = vst [vmem:[%s2269_s6 + $0x120] sm:$0xff] %v275_v36  ;;  %278 = vst [vmem:[%s2269_s6 + $0x128] sm:$0xff] %v277_v37  ;;  %v281_v39 = vld [vmem:[%s2261_s5 + $0x268] sm:$0xff] }
  0x29   : > { %280 = vst [vmem:[%s2269_s6 + $0x130] sm:$0xff] %v279_v38  ;;  %v283_v40 = vld [vmem:[%s2261_s5 + $0x280] sm:$0xff]  ;;  %v285_v41 = vld [vmem:[%s2261_s5 + $0x288] sm:$0xff]  ;;  %282 = vst [vmem:[%s2269_s6 + $0x138] sm:$0xff] %v281_v39 }
  0x2a   : > { %284 = vst [vmem:[%s2269_s6 + $0x140] sm:$0xff] %v283_v40  ;;  %286 = vst [vmem:[%s2269_s6 + $0x148] sm:$0xff] %v285_v41  ;;  %v287_v42 = vld [vmem:[%s2261_s5 + $0x2a0] sm:$0xff]  ;;  %v289_v43 = vld [vmem:[%s2261_s5 + $0x2a8] sm:$0xff] }
  0x2b   : > { %v291_v44 = vld [vmem:[%s2261_s5 + $0x2c0] sm:$0xff]  ;;  %288 = vst [vmem:[%s2269_s6 + $0x150] sm:$0xff] %v287_v42  ;;  %290 = vst [vmem:[%s2269_s6 + $0x158] sm:$0xff] %v289_v43  ;;  %v293_v45 = vld [vmem:[%s2261_s5 + $0x2c8] sm:$0xff] }
  0x2c   : > { %292 = vst [vmem:[%s2269_s6 + $0x160] sm:$0xff] %v291_v44  ;;  %v295_v46 = vld [vmem:[%s2261_s5 + $0x2e0] sm:$0xff]  ;;  %v297_v47 = vld [vmem:[%s2261_s5 + $0x2e8] sm:$0xff]  ;;  %294 = vst [vmem:[%s2269_s6 + $0x168] sm:$0xff] %v293_v45 }
  0x2d   : > { %296 = vst [vmem:[%s2269_s6 + $0x170] sm:$0xff] %v295_v46  ;;  %298 = vst [vmem:[%s2269_s6 + $0x178] sm:$0xff] %v297_v47 }
  0x2e PF: > { %p1788_p8 = scmp.ge.s32.totalorder %s2185_s19, 1  ;;  %p311_p9 = scmp.lt.s32.totalorder %s2185_s19, 3 }
  0x30   : > { %p312_p10 = pnand %p1788_p8, %p311_p9 }
  0x31   : > { %v368_v48 = vld [vmem:[%s2695_s0] sm:$0xff] (!%p312_p10)  ;;  %v369_v49 = vld [vmem:[%s2695_s0 + $0x8] sm:$0xff] (!%p312_p10)  ;;  %vm374_vm0 = vcmask (!%p312_p10), 130048   ;;  %v1811_v55 = vld [vmem:[%s2695_s0 + $0x10] sm:$0xff] (!%p312_p10)  ;;  %s318_s29 = sand.u32 (!%p312_p10), 1, %s2169_s15   ;;  %vm472_vm1 = vcmask (!%p312_p10), 523264  }
  0x32   : > { %315 = sbr.rel (%p312_p10) target bundleno = 652 (0x28c), region = 55  ;;  %v1795_v50 = vld [vmem:[%s2696_s1 + $0x20] sm:$0xff] (!%p312_p10)  ;;  %v2008_v51 = vpack.c.bf16 (!%p312_p10), %v369_v49, %v368_v48  ;;  %v1796_v53 = vld [vmem:[%s2696_s1 + $0x28] sm:$0xff] (!%p312_p10)  ;;  %v1812_v56 = vld [vmem:[%s2695_s0 + $0x18] sm:$0xff] (!%p312_p10)  ;;  %s2187_s6 = smov (!%p312_p10), 64   ;;  %vm595_vm2 = vcmask (!%p312_p10), 1048064  }
  0x33   : > { %1962 = vmatprep.mubr.msk.f32.mxu1 (!%p312_p10), %vm374_vm0, %v1795_v50  ;;  %v370_v52 = vld [vmem:[%s2696_s1] sm:$0xff] (!%p312_p10)  ;;  %v371_v54 = vld [vmem:[%s2696_s1 + $0x8] sm:$0xff] (!%p312_p10)  ;;  %v1797_v57 = vld [vmem:[%s2696_s1 + $0x30] sm:$0xff] (!%p312_p10)  ;;  %v2020_v58 = vpack.c.bf16 (!%p312_p10), %v1812_v56, %v1811_v55  ;;  %s2033_s30 = smul.u32 (!%p312_p10), 384, %s318_s29  ;;  %s1790_s7 = sshll.u32 (!%p312_p10), %s2177_s17, 2 }
  0x34   : > { %1952 = vmatprep.mubr.msk.f32.mxu0 (!%p312_p10), %vm374_vm0, %v370_v52  ;;  %2013 = vmatprep.subr.bf16.mxu1 (!%p312_p10), %v2008_v51  ;;  %v372_v59 = vld [vmem:[%s2696_s1 + $0x10] sm:$0xff] (!%p312_p10)  ;;  %v1798_v60 = vld [vmem:[%s2696_s1 + $0x38] sm:$0xff] (!%p312_p10)  ;;  %v1803_v62 = vld [vmem:[%s2696_s1 + $0x40] sm:$0xff] (!%p312_p10)  ;;  %p361_p11 = scmp.lt.s32.totalorder (!%p312_p10), %s1790_s7, 7  ;;  %s1789_s11 = sshll.u32 (!%p312_p10), %s318_s29, 8 }
  0x35   : > { %2009 = vmatprep.subr.bf16.mxu0 (!%p312_p10), %v2008_v51  ;;  %2015 = vmatpush3.bf16.msra.mxu1 (!%p312_p10), %v2008_v51  ;;  %v373_v61 = vld [vmem:[%s2696_s1 + $0x18] sm:$0xff] (!%p312_p10)  ;;  %v1804_v63 = vld [vmem:[%s2696_s1 + $0x48] sm:$0xff] (!%p312_p10)  ;;  %v1805_v0 = vld [vmem:[%s2696_s1 + $0x50] sm:$0xff] (!%p312_p10)  ;;  %s2438_s5 = scalar_lea.vmem (!%p312_p10), [#allocation3], %s2033_s30  ;;  %s2550_s15 = scalar_lea.vmem (!%p312_p10), [#allocation4], %s1789_s11 }
  0x36   : > { %2011 = vmatpush3.bf16.msra.mxu0 (!%p312_p10), %v2008_v51  ;;  %2021 = vmatprep.subr.bf16.mxu1 (!%p312_p10), %v2020_v58  ;;  %v1806_v1 = vld [vmem:[%s2696_s1 + $0x58] sm:$0xff] (!%p312_p10)  ;;  %v2075_v2 = vld [vmem:[%s2438_s5] ss:$16 sps:$4 sm:$0xff] (!%p312_p10)   ;;  %v2077_v3 = vld [vmem:[%s2438_s5 + $0x4] ss:$16 sps:$4 sm:$0xff] (!%p312_p10)  }
  0x37   : > { %2017 = vmatprep.subr.bf16.mxu0 (!%p312_p10), %v2008_v51  ;;  %v2078_v4 = vld [vmem:[%s2438_s5 + $0x8] ss:$16 sps:$4 sm:$0xff] (!%p312_p10)   ;;  %v2080_v5 = vld [vmem:[%s2438_s5 + $0xc] ss:$16 sps:$4 sm:$0xff] (!%p312_p10)   ;;  %v2081_v6 = vld [vmem:[%s2438_s5 + $0x20] ss:$16 sps:$4 sm:$0xff] (!%p312_p10)  }
  0x38   : > { %1963 = vmatmul.mubr.msk.f32.vlgmr.msra.gmra.mrb[0].mxu1 (!%p312_p10), %vm374_vm0, %v1796_v53  ;;  %v2083_v7 = vld [vmem:[%s2438_s5 + $0x24] ss:$16 sps:$4 sm:$0xff] (!%p312_p10)   ;;  %v2084_v8 = vld [vmem:[%s2438_s5 + $0x28] ss:$16 sps:$4 sm:$0xff] (!%p312_p10)   ;;  %v2086_v9 = vld [vmem:[%s2438_s5 + $0x2c] ss:$16 sps:$4 sm:$0xff] (!%p312_p10)  }
  0x39   : > { %1953 = vmatmul.mubr.msk.f32.vlgmr.msra.gmra.mrb[0].mxu0 %vm374_vm0, %v371_v54  ;;  %1965 = vmatprep.mubr.msk.f32.mxu1 %vm374_vm0, %v1797_v57  ;;  %v2089_v10 = vld [vmem:[%s2438_s5 + $0x44] ss:$16 sps:$4 sm:$0xff]   ;;  %v2087_v11 = vld [vmem:[%s2438_s5 + $0x40] ss:$16 sps:$4 sm:$0xff]   ;;  %v2092_v12 = vld [vmem:[%s2438_s5 + $0x4c] ss:$16 sps:$4 sm:$0xff]  }
  0x3a   : > { %2019 = vmatpush3.bf16.msra.mxu0 %v2008_v51  ;;  %1955 = vmatprep.mubr.msk.f32.mxu0 %vm374_vm0, %v372_v59  ;;  %v2090_v13 = vld [vmem:[%s2438_s5 + $0x48] ss:$16 sps:$4 sm:$0xff]   ;;  %v2095_v14 = vld [vmem:[%s2438_s5 + $0x64] ss:$16 sps:$4 sm:$0xff]   ;;  %v2098_v15 = vld [vmem:[%s2438_s5 + $0x6c] ss:$16 sps:$4 sm:$0xff]  }
  0x3b   : > { %2025 = vmatprep.subr.bf16.mxu0 %v2020_v58  ;;  %2023 = vmatpush3.bf16.msra.mxu1 %v2020_v58  ;;  %v2093_v16 = vld [vmem:[%s2438_s5 + $0x60] ss:$16 sps:$4 sm:$0xff]   ;;  %v2096_v17 = vld [vmem:[%s2438_s5 + $0x68] ss:$16 sps:$4 sm:$0xff]   ;;  %v2101_v18 = vld [vmem:[%s2438_s5 + $0x84] ss:$16 sps:$4 sm:$0xff]  }
  0x3c   : > { %1966 = vmatmul.mubr.msk.f32.gmra.mrb[2].mxu1 %vm374_vm0, %v1798_v60  ;;  %2029 = vmatprep.subr.bf16.mxu1 %v2020_v58  ;;  %v2104_v19 = vld [vmem:[%s2438_s5 + $0x8c] ss:$16 sps:$4 sm:$0xff]   ;;  %v2099_v20 = vld [vmem:[%s2438_s5 + $0x80] ss:$16 sps:$4 sm:$0xff]   ;;  %v2102_v21 = vld [vmem:[%s2438_s5 + $0x88] ss:$16 sps:$4 sm:$0xff]  }
  0x3d   : > { %1956 = vmatmul.mubr.msk.f32.gmra.mrb[2].mxu0 %vm374_vm0, %v373_v61  ;;  %1982 = vmatprep.mubr.msk.f32.mxu1 %vm374_vm0, %v370_v52  ;;  %v2107_v22 = vld [vmem:[%s2438_s5 + $0xa4] ss:$16 sps:$4 sm:$0xff]   ;;  %v2110_v23 = vld [vmem:[%s2438_s5 + $0xac] ss:$16 sps:$4 sm:$0xff]   ;;  %v2105_v24 = vld [vmem:[%s2438_s5 + $0xa0] ss:$16 sps:$4 sm:$0xff]  }
  0x3e   : > { %1972 = vmatprep.mubr.msk.f32.mxu0 %vm374_vm0, %v1803_v62  ;;  %v2108_v25 = vld [vmem:[%s2438_s5 + $0xa8] ss:$16 sps:$4 sm:$0xff]   ;;  %v2113_v26 = vld [vmem:[%s2438_s5 + $0xc4] ss:$16 sps:$4 sm:$0xff]   ;;  %v2111_v27 = vld [vmem:[%s2438_s5 + $0xc0] ss:$16 sps:$4 sm:$0xff]  }
  0x3f   : > { %v2116_v28 = vld [vmem:[%s2438_s5 + $0xcc] ss:$16 sps:$4 sm:$0xff]   ;;  %v2114_v29 = vld [vmem:[%s2438_s5 + $0xc8] ss:$16 sps:$4 sm:$0xff]   ;;  %v2119_v30 = vld [vmem:[%s2438_s5 + $0xe4] ss:$16 sps:$4 sm:$0xff]  }
  0x40   : > { %1983 = vmatmul.mubr.msk.f32.vlgmr.msra.gmra.mrb[4].mxu1 %vm374_vm0, %v371_v54  ;;  %v2122_v31 = vld [vmem:[%s2438_s5 + $0xec] ss:$16 sps:$4 sm:$0xff]   ;;  %v2117_v32 = vld [vmem:[%s2438_s5 + $0xe0] ss:$16 sps:$4 sm:$0xff]   ;;  %v2120_v33 = vld [vmem:[%s2438_s5 + $0xe8] ss:$16 sps:$4 sm:$0xff]  }
  0x41   : > { %1973 = vmatmul.mubr.msk.f32.vlgmr.msra.gmra.mrb[4].mxu0 %vm374_vm0, %v1804_v63  ;;  %2031 = vmatpush3.bf16.msra.mxu1 %v2020_v58  ;;  %v2125_v34 = vld [vmem:[%s2438_s5 + $0x104] ss:$16 sps:$4 sm:$0xff]   ;;  %v2128_v35 = vld [vmem:[%s2438_s5 + $0x10c] ss:$16 sps:$4 sm:$0xff]   ;;  %v2123_v36 = vld [vmem:[%s2438_s5 + $0x100] ss:$16 sps:$4 sm:$0xff]  }
  0x42   : > { %2027 = vmatpush3.bf16.msra.mxu0 %v2020_v58  ;;  %1975 = vmatprep.mubr.msk.f32.mxu0 %vm374_vm0, %v1805_v0  ;;  %v2126_v37 = vld [vmem:[%s2438_s5 + $0x108] ss:$16 sps:$4 sm:$0xff]   ;;  %v2129_v38 = vld [vmem:[%s2438_s5 + $0x120] ss:$16 sps:$4 sm:$0xff]   ;;  %v2131_v39 = vld [vmem:[%s2438_s5 + $0x124] ss:$16 sps:$4 sm:$0xff]  }
  0x43   : > { %1985 = vmatprep.mubr.msk.f32.mxu1 %vm374_vm0, %v372_v59  ;;  %1386 = vmatprep.subr.bf16.mxu0 %v2077_v3  ;;  %v2132_v40 = vld [vmem:[%s2438_s5 + $0x128] ss:$16 sps:$4 sm:$0xff]   ;;  %v2134_v41 = vld [vmem:[%s2438_s5 + $0x12c] ss:$16 sps:$4 sm:$0xff]   ;;  %v2135_v42 = vld [vmem:[%s2438_s5 + $0x140] ss:$16 sps:$4 sm:$0xff]  }
  0x44   : > { %1986 = vmatmul.mubr.msk.f32.gmra.mrb[6].mxu1 %vm374_vm0, %v373_v61  ;;  %1459 = vmatprep.subr.bf16.mxu1 %v2080_v5  ;;  %v2137_v43 = vld [vmem:[%s2438_s5 + $0x144] ss:$16 sps:$4 sm:$0xff]   ;;  %v2138_v44 = vld [vmem:[%s2438_s5 + $0x148] ss:$16 sps:$4 sm:$0xff]   ;;  %v2140_v45 = vld [vmem:[%s2438_s5 + $0x14c] ss:$16 sps:$4 sm:$0xff]  }
  0x45   : > { %1976 = vmatmul.mubr.msk.f32.gmra.mrb[6].mxu0 %vm374_vm0, %v1806_v1  ;;  %2002 = vmatprep.mubr.msk.f32.mxu1 %vm374_vm0, %v1803_v62  ;;  %v2141_v46 = vld [vmem:[%s2438_s5 + $0x160] ss:$16 sps:$4 sm:$0xff]   ;;  %v2143_v47 = vld [vmem:[%s2438_s5 + $0x164] ss:$16 sps:$4 sm:$0xff]   ;;  %v2144_v48 = vld [vmem:[%s2438_s5 + $0x168] ss:$16 sps:$4 sm:$0xff]  }
  0x46   : > { %1992 = vmatprep.mubr.msk.f32.mxu0 %vm374_vm0, %v1795_v50  ;;  %v2146_v49 = vld [vmem:[%s2438_s5 + $0x16c] ss:$16 sps:$4 sm:$0xff]   ;;  %s2708_s7 = smov (!%p361_p11, %s1790_s7), 7  ;;  %s1911_s12 = sshll.u32 (%p2248_p6), %s2177_s17, 5 }
  0x47   : > { %s363_s10 = scalar_lea.vmem %s2698_s3, %s2708_s7  ;;  %s2617_s21 = scalar_lea.vmem (%p2248_p6), %s2699_s4, %s1911_s12 }
  0x48   : > { %2003 = vmatmul.mubr.msk.f32.vlgmr.msra.gmra.mrb[8].mxu1 %vm374_vm0, %v1804_v63 }
  0x49   : > { %1993 = vmatmul.mubr.msk.f32.vlgmr.msra.gmra.mrb[8].mxu0 %vm374_vm0, %v1796_v53  ;;  %2005 = vmatprep.mubr.msk.f32.mxu1 %vm374_vm0, %v1805_v0 }
  0x4a   : > { %1995 = vmatprep.mubr.msk.f32.mxu0 %vm374_vm0, %v1797_v57  ;;  %1387 = vmatpush1.bf16.msra.mxu0 %v2075_v2 }
  0x4b   : > { %1460 = vmatpush1.bf16.msra.mxu1 %v2078_v4  ;;  %1388 = vmatprep.subr.bf16.mxu0 %v2083_v7 }
  0x4c   : > { %2006 = vmatmul.mubr.msk.f32.gmra.mrb[10].mxu1 %vm374_vm0, %v1806_v1  ;;  %1461 = vmatprep.subr.bf16.mxu1 %v2086_v9 }
  0x4d   : > { %1996 = vmatmul.mubr.msk.f32.gmra.mrb[10].mxu0 %vm374_vm0, %v1798_v60 }
  0x4e   : > { %1389 = vmatpush1.bf16.msra.mxu0 %v2081_v6 }
  0x4f   : > { %1462 = vmatpush1.bf16.msra.mxu1 %v2084_v8  ;;  %1390 = vmatprep.subr.bf16.mxu0 %v2089_v10 }
  0x50   : > { %1463 = vmatprep.subr.bf16.mxu1 %v2092_v12 }
  0x52   : > { %1391 = vmatpush1.bf16.msra.mxu0 %v2087_v11 }
  0x53   : > { %1464 = vmatpush1.bf16.msra.mxu1 %v2090_v13  ;;  %1392 = vmatprep.subr.bf16.mxu0 %v2095_v14 }
  0x54   : > { %1465 = vmatprep.subr.bf16.mxu1 %v2098_v15 }
  0x56   : > { %1393 = vmatpush1.bf16.msra.mxu0 %v2093_v16 }
  0x57   : > { %1466 = vmatpush1.bf16.msra.mxu1 %v2096_v17  ;;  %1394 = vmatprep.subr.bf16.mxu0 %v2101_v18 }
  0x58   : > { %1467 = vmatprep.subr.bf16.mxu1 %v2104_v19 }
  0x5a   : > { %1395 = vmatpush1.bf16.msra.mxu0 %v2099_v20 }
  0x5b   : > { %1468 = vmatpush1.bf16.msra.mxu1 %v2102_v21  ;;  %1396 = vmatprep.subr.bf16.mxu0 %v2107_v22 }
  0x5c   : > { %1469 = vmatprep.subr.bf16.mxu1 %v2110_v23 }
  0x5e   : > { %1397 = vmatpush1.bf16.msra.mxu0 %v2105_v24 }
  0x5f   : > { %1470 = vmatpush1.bf16.msra.mxu1 %v2108_v25  ;;  %1398 = vmatprep.subr.bf16.mxu0 %v2113_v26 }
  0x60   : > { %1471 = vmatprep.subr.bf16.mxu1 %v2116_v28 }
  0x62   : > { %1399 = vmatpush1.bf16.msra.mxu0 %v2111_v27 }
  0x63   : > { %1472 = vmatpush1.bf16.msra.mxu1 %v2114_v29  ;;  %1400 = vmatprep.subr.bf16.mxu0 %v2119_v30 }
  0x64   : > { %1473 = vmatprep.subr.bf16.mxu1 %v2122_v31 }
  0x66   : > { %1401 = vmatpush1.bf16.msra.mxu0 %v2117_v32 }
  0x67   : > { %1474 = vmatpush1.bf16.msra.mxu1 %v2120_v33  ;;  %1402 = vmatprep.subr.bf16.mxu0 %v2125_v34 }
  0x68   : > { %1475 = vmatprep.subr.bf16.mxu1 %v2128_v35 }
  0x6a   : > { %1403 = vmatpush1.bf16.msra.mxu0 %v2123_v36 }
  0x6b   : > { %1476 = vmatpush1.bf16.msra.mxu1 %v2126_v37  ;;  %1404 = vmatprep.subr.bf16.mxu0 %v2131_v39 }
  0x6c   : > { %1477 = vmatprep.subr.bf16.mxu1 %v2134_v41 }
  0x6e   : > { %1405 = vmatpush1.bf16.msra.mxu0 %v2129_v38 }
  0x6f   : > { %1478 = vmatpush1.bf16.msra.mxu1 %v2132_v40  ;;  %1406 = vmatprep.subr.bf16.mxu0 %v2137_v43 }
  0x70   : > { %1479 = vmatprep.subr.bf16.mxu1 %v2140_v45 }
  0x72   : > { %1407 = vmatpush1.bf16.msra.mxu0 %v2135_v42  ;;  %v1114_v42 = vlaneseq }
  0x73   : > { %1480 = vmatpush1.bf16.msra.mxu1 %v2138_v44  ;;  %1408 = vmatprep.subr.bf16.mxu0 %v2143_v47 }
  0x74   : > { %1481 = vmatprep.subr.bf16.mxu1 %v2146_v49  ;;  %v1115_v43 = vshrl.u32 %v1114_v42, 7 }
  0x76   : > { %1409 = vmatpush1.bf16.msra.mxu0 %v2141_v46  ;;  %v1116_v44 = vsub.s32 0, %v1115_v43  ;;  %v1124_v45 = vsub.s32 2, %v1115_v43  ;;  %v1112_v46 = vld [vmem:[%s363_s10] sm:$0xf]  ;;  %v1120_v47 = vsub.s32 1, %v1115_v43 }
  0x77   : > { %1482 = vmatpush1.bf16.msra.mxu1 %v2144_v48  ;;  %v1128_v48 = vsub.s32 3, %v1115_v43 }
  0x78   : > { %v2532_v49 = vrot.slane %v1112_v46, %v1116_v44 }
 0x10b   : > { %v1964_v50 = vpop.f32.mrb[0].mxu1 }
 0x10c   : > { %v1954_v51 = vpop.f32.mrb[0].mxu0  ;;  %v560_v52 = vpop.f32.mrb[1].mxu1 }
 0x10d   : > { %474 = vst.msk [vmem:[#allocation2 + $0x10] sm:$0xff] %vm472_vm1, %v1954_v51  ;;  %v453_v53 = vpop.f32.mrb[1].mxu0  ;;  %583 = vrot.lane.b32.xlu0 %v560_v52, %s2187_s6  ;;  %v2536_v51 = vrot.slane %v1112_v46, %v1120_v47  ;;  %v2538_v52 = vrot.slane %v1112_v46, %v1128_v48 }
 0x10e   : > { %473 = vst.msk [vmem:[#allocation2] sm:$0xff] %vm472_vm1, %v453_v53 }
 0x10f   : > { %v1967_v54 = vpop.f32.mrb[2].mxu1 }
 0x110   : > { %v1957_v55 = vpop.f32.mrb[2].mxu0  ;;  %v570_v56 = vpop.f32.mrb[3].mxu1 }
 0x111   : > { %476 = vst.msk [vmem:[#allocation2 + $0x30] sm:$0xff] %vm472_vm1, %v1957_v55  ;;  %v463_v57 = vpop.f32.mrb[3].mxu0  ;;  %585 = vrot.lane.b32.xlu0 %v1964_v50, %s2187_s6  ;;  %587 = vrot.lane.b32.xlu1 %v570_v56, %s2187_s6  ;;  %v2534_v50 = vrot.slane %v1112_v46, %v1124_v45 }
 0x112   : > { %475 = vst.msk [vmem:[#allocation2 + $0x20] sm:$0xff] %vm472_vm1, %v463_v57 }
 0x113   : > { %v1984_v59 = vpop.f32.mrb[4].mxu1 }
 0x114   : > { %v1974_v58 = vpop.f32.mrb[4].mxu0  ;;  %811 = vst.msk [vmem:[#allocation2 + $0x50] sm:$0xff] %vm472_vm1, %v1984_v59  ;;  %v791_v61 = vpop.f32.mrb[5].mxu1 }
 0x115   : > { %703 = vst.msk [vmem:[#allocation2 + $0x18] sm:$0xff] %vm472_vm1, %v1974_v58  ;;  %v683_v60 = vpop.f32.mrb[5].mxu0  ;;  %589 = vrot.lane.b32.xlu1 %v1967_v54, %s2187_s6  ;;  %810 = vst.msk [vmem:[#allocation2 + $0x40] sm:$0xff] %vm472_vm1, %v791_v61 }
 0x116   : > { %702 = vst.msk [vmem:[#allocation2 + $0x8] sm:$0xff] %vm472_vm1, %v683_v60 }
 0x117   : > { %v1987_v63 = vpop.f32.mrb[6].mxu1 }
 0x118   : > { %v1977_v62 = vpop.f32.mrb[6].mxu0  ;;  %813 = vst.msk [vmem:[#allocation2 + $0x70] sm:$0xff] %vm472_vm1, %v1987_v63  ;;  %v801_v1 = vpop.f32.mrb[7].mxu1 }
 0x119   : > { %705 = vst.msk [vmem:[#allocation2 + $0x38] sm:$0xff] %vm472_vm1, %v1977_v62  ;;  %v693_v0 = vpop.f32.mrb[7].mxu0  ;;  %812 = vst.msk [vmem:[#allocation2 + $0x60] sm:$0xff] %vm472_vm1, %v801_v1 }
 0x11a   : > { %704 = vst.msk [vmem:[#allocation2 + $0x28] sm:$0xff] %vm472_vm1, %v693_v0 }
 0x11b   : > { %v2004_v4 = vpop.f32.mrb[8].mxu1 }
 0x11c   : > { %v1994_v2 = vpop.f32.mrb[8].mxu0  ;;  %v1043_v3 = vld [vmem:[#allocation2 + $0x18] sm:$0xff]  ;;  %1037 = vst.msk [vmem:[#allocation2 + $0x58] sm:$0xff] %vm472_vm1, %v2004_v4  ;;  %v1017_v7 = vpop.f32.mrb[9].mxu1 }
 0x11d   : > { %v896_v5 = vpop.f32.mrb[9].mxu0  ;;  %921 = vrot.lane.b32.xlu1 %v1994_v2, %s2187_s6  ;;  %v1041_v6 = vld [vmem:[#allocation2 + $0x8] sm:$0xff]  ;;  %1036 = vst.msk [vmem:[#allocation2 + $0x48] sm:$0xff] %vm472_vm1, %v1017_v7 }
 0x11e   : > { %919 = vrot.lane.b32.xlu0 %v896_v5, %s2187_s6  ;;  %v1057_v8 = vpack.c.bf16 %v1043_v3, %v1041_v6 }
 0x11f   : > { %v2007_v10 = vpop.f32.mrb[10].mxu1 }
 0x120   : > { %1881 = vmatprep.mubr.msk.bf16.mxu0 %vm472_vm1, %v1057_v8  ;;  %1885 = vmatprep.mubr.msk.bf16.mxu1 %vm472_vm1, %v1057_v8  ;;  %v1997_v9 = vpop.f32.mrb[10].mxu0  ;;  %1039 = vst.msk [vmem:[#allocation2 + $0x78] sm:$0xff] %vm472_vm1, %v2007_v10  ;;  %v1027_v12 = vpop.f32.mrb[11].mxu1  ;;  %v1047_v18 = vld [vmem:[#allocation2 + $0x38] sm:$0xff] }
 0x121   : > { %v906_v11 = vpop.f32.mrb[11].mxu0  ;;  %925 = vrot.lane.b32.xlu1 %v1997_v9, %s2187_s6  ;;  %1038 = vst.msk [vmem:[#allocation2 + $0x68] sm:$0xff] %vm472_vm1, %v1027_v12  ;;  %v1045_v17 = vld [vmem:[#allocation2 + $0x28] sm:$0xff] }
 0x122   : > { %923 = vrot.lane.b32.xlu0 %v906_v11, %s2187_s6  ;;  %v1059_v22 = vpack.c.bf16 %v1047_v18, %v1045_v17 }
 0x123   : > { %v1051_v26 = vld [vmem:[#allocation2 + $0x58] sm:$0xff] }
 0x124   : > { %v1049_v25 = vld [vmem:[#allocation2 + $0x48] sm:$0xff] }
 0x125   : > { %v1061_v31 = vpack.c.bf16 %v1051_v26, %v1049_v25 }
 0x127   : > { %v1055_v36 = vld [vmem:[#allocation2 + $0x78] sm:$0xff] }
 0x128   : > { %v1053_v35 = vld [vmem:[#allocation2 + $0x68] sm:$0xff] }
 0x129   : > { %v1063_v38 = vpack.c.bf16 %v1055_v36, %v1053_v35 }
 0x17f   : > { %v584_v13 = vpop.permute.xlu0 %583 }
 0x180   : > { %596 = vst.msk [vmem:[#allocation2] sm:$0xff] %vm595_vm2, %v584_v13 }
 0x183   : > { %v586_v14 = vpop.permute.xlu0 %585  ;;  %v588_v15 = vpop.permute.xlu1 %587 }
 0x184   : > { %597 = vst.msk [vmem:[#allocation2 + $0x10] sm:$0xff] %vm595_vm2, %v586_v14  ;;  %598 = vst.msk [vmem:[#allocation2 + $0x20] sm:$0xff] %vm595_vm2, %v588_v15 }
 0x187   : > { %v590_v16 = vpop.permute.xlu1 %589  ;;  %v1040_v19 = vld [vmem:[#allocation2] sm:$0xff] }
 0x188   : > { %599 = vst.msk [vmem:[#allocation2 + $0x30] sm:$0xff] %vm595_vm2, %v590_v16 }
 0x18b   : > { %v1042_v20 = vld [vmem:[#allocation2 + $0x10] sm:$0xff]  ;;  %v1044_v27 = vld [vmem:[#allocation2 + $0x20] sm:$0xff] }
 0x18c   : > { %v1056_v21 = vpack.c.bf16 %v1042_v20, %v1040_v19 }
 0x18e   : > { %1419 = vmatmul.mubr.bf16.vlgmr.msra.gmra.mrb[12].mxu0 %v1056_v21  ;;  %1492 = vmatmul.mubr.bf16.vlgmr.msra.gmra.mrb[12].mxu1 %v1056_v21 }
 0x18f   : > { %v922_v23 = vpop.permute.xlu1 %921  ;;  %1882 = vmatprep.mubr.msk.bf16.mxu0 %vm472_vm1, %v1059_v22  ;;  %1886 = vmatprep.mubr.msk.bf16.mxu1 %vm472_vm1, %v1059_v22  ;;  %v1046_v28 = vld [vmem:[#allocation2 + $0x30] sm:$0xff] }
 0x190   : > { %932 = vst.msk [vmem:[#allocation2 + $0x50] sm:$0xff] %vm595_vm2, %v922_v23  ;;  %v920_v24 = vpop.permute.xlu0 %919  ;;  %v1058_v32 = vpack.c.bf16 %v1046_v28, %v1044_v27 }
 0x191   : > { %931 = vst.msk [vmem:[#allocation2 + $0x40] sm:$0xff] %vm595_vm2, %v920_v24 }
 0x193   : > { %v926_v29 = vpop.permute.xlu1 %925 }
 0x194   : > { %934 = vst.msk [vmem:[#allocation2 + $0x70] sm:$0xff] %vm595_vm2, %v926_v29  ;;  %v924_v30 = vpop.permute.xlu0 %923 }
 0x195   : > { %933 = vst.msk [vmem:[#allocation2 + $0x60] sm:$0xff] %vm595_vm2, %v924_v30 }
 0x196   : > { %1429 = vmatmul.mubr.bf16.gmra.mrb[16].mxu0 %v1058_v32  ;;  %1502 = vmatmul.mubr.bf16.gmra.mrb[16].mxu1 %v1058_v32 }
 0x197   : > { %1883 = vmatprep.mubr.msk.bf16.mxu0 %vm472_vm1, %v1061_v31  ;;  %1887 = vmatprep.mubr.msk.bf16.mxu1 %vm472_vm1, %v1061_v31  ;;  %v1050_v34 = vld [vmem:[#allocation2 + $0x50] sm:$0xff] }
 0x198   : > { %v1048_v33 = vld [vmem:[#allocation2 + $0x40] sm:$0xff] }
 0x199   : > { %v1060_v37 = vpack.c.bf16 %v1050_v34, %v1048_v33 }
 0x19b   : > { %v1054_v40 = vld [vmem:[#allocation2 + $0x70] sm:$0xff] }
 0x19c   : > { %v1052_v39 = vld [vmem:[#allocation2 + $0x60] sm:$0xff] }
 0x19d   : > { %v1062_v41 = vpack.c.bf16 %v1054_v40, %v1052_v39 }
 0x19e   : > { %1439 = vmatmul.mubr.bf16.gmra.mrb[20].mxu0 %v1060_v37  ;;  %1512 = vmatmul.mubr.bf16.gmra.mrb[20].mxu1 %v1060_v37 }
 0x19f   : > { %1884 = vmatprep.mubr.msk.bf16.mxu0 %vm472_vm1, %v1063_v38  ;;  %1888 = vmatprep.mubr.msk.bf16.mxu1 %vm472_vm1, %v1063_v38 }
 0x1a6   : > { %1449 = vmatmul.mubr.bf16.gmra.mrb[24].mxu0 %v1062_v41  ;;  %1522 = vmatmul.mubr.bf16.gmra.mrb[24].mxu1 %v1062_v41 }
 0x261   : > { %v1420_v53 = vpop.f32.mrb[12].mxu0  ;;  %v1493_v54 = vpop.f32.mrb[12].mxu1 }
 0x262   : > { %v1421_v55 = vadd.f32 %v1420_v53, %v2532_v49  ;;  %v1494_v56 = vadd.f32 %v1493_v54, %v2534_v50  ;;  %v1422_v57 = vpop.f32.mrb[13].mxu0  ;;  %v1495_v58 = vpop.f32.mrb[13].mxu1 }
 0x263   : > { %v1423_v59 = vadd.f32 %v1422_v57, %v2536_v51  ;;  %v1496_v60 = vadd.f32 %v1495_v58, %v2538_v52  ;;  %v1424_v61 = vpop.f32.mrb[14].mxu0  ;;  %v1497_v62 = vpop.f32.mrb[14].mxu1 }
 0x264   : > { %v1532_v63 = vmax.f32 %v1421_v55, 0.0  ;;  %v1534_v0 = vmax.f32 %v1494_v56, 0.0  ;;  %v1425_v1 = vadd.f32 %v1424_v61, %v2532_v49  ;;  %v1498_v2 = vadd.f32 %v1497_v62, %v2534_v50  ;;  %v1426_v3 = vpop.f32.mrb[15].mxu0  ;;  %v1499_v4 = vpop.f32.mrb[15].mxu1 }
 0x265   : > { %v1533_v5 = vmax.f32 %v1423_v59, 0.0  ;;  %v1535_v6 = vmax.f32 %v1496_v60, 0.0  ;;  %v1427_v7 = vadd.f32 %v1426_v3, %v2536_v51  ;;  %v1500_v8 = vadd.f32 %v1499_v4, %v2538_v52 }
 0x266   : > { %1564 = vst [vmem:[%s2550_s15] sm:$0xff] %v1532_v63  ;;  %1566 = vst [vmem:[%s2550_s15 + $0x10] sm:$0xff] %v1534_v0  ;;  %v1536_v9 = vmax.f32 %v1425_v1, 0.0  ;;  %v1538_v10 = vmax.f32 %v1498_v2, 0.0 }
 0x267   : > { %1565 = vst [vmem:[%s2550_s15 + $0x8] sm:$0xff] %v1533_v5  ;;  %1567 = vst [vmem:[%s2550_s15 + $0x18] sm:$0xff] %v1535_v6  ;;  %v1537_v11 = vmax.f32 %v1427_v7, 0.0  ;;  %v1539_v12 = vmax.f32 %v1500_v8, 0.0 }
 0x268   : > { %1568 = vst [vmem:[%s2550_s15 + $0x20] sm:$0xff] %v1536_v9  ;;  %1570 = vst [vmem:[%s2550_s15 + $0x30] sm:$0xff] %v1538_v10 }
 0x269   : > { %1569 = vst [vmem:[%s2550_s15 + $0x28] sm:$0xff] %v1537_v11  ;;  %1571 = vst [vmem:[%s2550_s15 + $0x38] sm:$0xff] %v1539_v12  ;;  %v1430_v13 = vpop.f32.mrb[16].mxu0  ;;  %v1503_v14 = vpop.f32.mrb[16].mxu1 }
 0x26a   : > { %v1431_v15 = vadd.f32 %v1430_v13, %v2532_v49  ;;  %v1504_v16 = vadd.f32 %v1503_v14, %v2534_v50  ;;  %v1432_v17 = vpop.f32.mrb[17].mxu0  ;;  %v1505_v18 = vpop.f32.mrb[17].mxu1 }
 0x26b   : > { %v1433_v19 = vadd.f32 %v1432_v17, %v2536_v51  ;;  %v1506_v20 = vadd.f32 %v1505_v18, %v2538_v52  ;;  %v1434_v21 = vpop.f32.mrb[18].mxu0  ;;  %v1507_v22 = vpop.f32.mrb[18].mxu1 }
 0x26c   : > { %v1540_v23 = vmax.f32 %v1431_v15, 0.0  ;;  %v1542_v24 = vmax.f32 %v1504_v16, 0.0  ;;  %v1435_v25 = vadd.f32 %v1434_v21, %v2532_v49  ;;  %v1508_v26 = vadd.f32 %v1507_v22, %v2534_v50  ;;  %v1436_v27 = vpop.f32.mrb[19].mxu0  ;;  %v1509_v28 = vpop.f32.mrb[19].mxu1 }
 0x26d   : > { %v1541_v29 = vmax.f32 %v1433_v19, 0.0  ;;  %v1543_v30 = vmax.f32 %v1506_v20, 0.0  ;;  %v1437_v31 = vadd.f32 %v1436_v27, %v2536_v51  ;;  %v1510_v32 = vadd.f32 %v1509_v28, %v2538_v52 }
 0x26e   : > { %1572 = vst [vmem:[%s2550_s15 + $0x40] sm:$0xff] %v1540_v23  ;;  %1574 = vst [vmem:[%s2550_s15 + $0x50] sm:$0xff] %v1542_v24  ;;  %v1544_v33 = vmax.f32 %v1435_v25, 0.0  ;;  %v1546_v34 = vmax.f32 %v1508_v26, 0.0  ;;  %v1628_v24 = vld [vmem:[%s2550_s15 + $0x18] sm:$0xff] (%p2248_p6) }
 0x26f   : > { %1573 = vst [vmem:[%s2550_s15 + $0x48] sm:$0xff] %v1541_v29  ;;  %1575 = vst [vmem:[%s2550_s15 + $0x58] sm:$0xff] %v1543_v30  ;;  %v1545_v35 = vmax.f32 %v1437_v31, 0.0  ;;  %v1547_v36 = vmax.f32 %v1510_v32, 0.0  ;;  %v1630_v25 = vld [vmem:[%s2550_s15 + $0x20] sm:$0xff] (%p2248_p6)  ;;  %v1634_v27 = vld [vmem:[%s2550_s15 + $0x30] sm:$0xff] (%p2248_p6) }
 0x270   : > { %1576 = vst [vmem:[%s2550_s15 + $0x60] sm:$0xff] %v1544_v33  ;;  %1578 = vst [vmem:[%s2550_s15 + $0x70] sm:$0xff] %v1546_v34  ;;  %v1632_v26 = vld [vmem:[%s2550_s15 + $0x28] sm:$0xff] (%p2248_p6)  ;;  %v1636_v28 = vld [vmem:[%s2550_s15 + $0x38] sm:$0xff] (%p2248_p6) }
 0x271   : > { %1577 = vst [vmem:[%s2550_s15 + $0x68] sm:$0xff] %v1545_v35  ;;  %1579 = vst [vmem:[%s2550_s15 + $0x78] sm:$0xff] %v1547_v36  ;;  %v1440_v37 = vpop.f32.mrb[20].mxu0  ;;  %v1513_v38 = vpop.f32.mrb[20].mxu1 }
 0x272   : > { %v1441_v39 = vadd.f32 %v1440_v37, %v2532_v49  ;;  %v1514_v40 = vadd.f32 %v1513_v38, %v2534_v50  ;;  %v1442_v41 = vpop.f32.mrb[21].mxu0  ;;  %v1515_v42 = vpop.f32.mrb[21].mxu1  ;;  %1629 = vst [vmem:[%s2617_s21 + $0x18] sm:$0xff] (%p2248_p6), %v1628_v24  ;;  %1631 = vst [vmem:[%s2617_s21 + $0x40] sm:$0xff] (%p2248_p6), %v1630_v25 }
 0x273   : > { %v1443_v43 = vadd.f32 %v1442_v41, %v2536_v51  ;;  %v1516_v44 = vadd.f32 %v1515_v42, %v2538_v52  ;;  %v1444_v45 = vpop.f32.mrb[22].mxu0  ;;  %v1517_v46 = vpop.f32.mrb[22].mxu1  ;;  %1633 = vst [vmem:[%s2617_s21 + $0x48] sm:$0xff] (%p2248_p6), %v1632_v26  ;;  %1635 = vst [vmem:[%s2617_s21 + $0x50] sm:$0xff] (%p2248_p6), %v1634_v27 }
 0x274   : > { %v1548_v47 = vmax.f32 %v1441_v39, 0.0  ;;  %v1550_v48 = vmax.f32 %v1514_v40, 0.0  ;;  %v1445_v53 = vadd.f32 %v1444_v45, %v2532_v49  ;;  %v1518_v54 = vadd.f32 %v1517_v46, %v2534_v50  ;;  %v1446_v55 = vpop.f32.mrb[23].mxu0  ;;  %v1519_v56 = vpop.f32.mrb[23].mxu1  ;;  %1637 = vst [vmem:[%s2617_s21 + $0x58] sm:$0xff] (%p2248_p6), %v1636_v28 }
 0x275   : > { %v1549_v57 = vmax.f32 %v1443_v43, 0.0  ;;  %v1551_v58 = vmax.f32 %v1516_v44, 0.0  ;;  %v1447_v59 = vadd.f32 %v1446_v55, %v2536_v51  ;;  %v1520_v60 = vadd.f32 %v1519_v56, %v2538_v52  ;;  %v1638_v29 = vld [vmem:[%s2550_s15 + $0x40] sm:$0xff] (%p2248_p6)  ;;  %v1642_v31 = vld [vmem:[%s2550_s15 + $0x50] sm:$0xff] (%p2248_p6) }
 0x276   : > { %1889 = vst [vmem:[%s2550_s15 + $0x80] sm:$0xff] %v1548_v47  ;;  %1891 = vst [vmem:[%s2550_s15 + $0x90] sm:$0xff] %v1550_v48  ;;  %v1552_v61 = vmax.f32 %v1445_v53, 0.0  ;;  %v1554_v62 = vmax.f32 %v1518_v54, 0.0  ;;  %v1640_v30 = vld [vmem:[%s2550_s15 + $0x48] sm:$0xff] (%p2248_p6)  ;;  %v1644_v32 = vld [vmem:[%s2550_s15 + $0x58] sm:$0xff] (%p2248_p6) }
 0x277   : > { %1890 = vst [vmem:[%s2550_s15 + $0x88] sm:$0xff] %v1549_v57  ;;  %1892 = vst [vmem:[%s2550_s15 + $0x98] sm:$0xff] %v1551_v58  ;;  %v1553_v63 = vmax.f32 %v1447_v59, 0.0  ;;  %v1555_v0 = vmax.f32 %v1520_v60, 0.0  ;;  %v1646_v33 = vld [vmem:[%s2550_s15 + $0x60] sm:$0xff] (%p2248_p6)  ;;  %v1650_v35 = vld [vmem:[%s2550_s15 + $0x70] sm:$0xff] (%p2248_p6) }
 0x278   : > { %1893 = vst [vmem:[%s2550_s15 + $0xa0] sm:$0xff] %v1552_v61  ;;  %1895 = vst [vmem:[%s2550_s15 + $0xb0] sm:$0xff] %v1554_v62  ;;  %v1648_v34 = vld [vmem:[%s2550_s15 + $0x68] sm:$0xff] (%p2248_p6)  ;;  %v1652_v36 = vld [vmem:[%s2550_s15 + $0x78] sm:$0xff] (%p2248_p6) }
 0x279   : > { %1894 = vst [vmem:[%s2550_s15 + $0xa8] sm:$0xff] %v1553_v63  ;;  %1896 = vst [vmem:[%s2550_s15 + $0xb8] sm:$0xff] %v1555_v0  ;;  %v1450_v1 = vpop.f32.mrb[24].mxu0  ;;  %v1523_v2 = vpop.f32.mrb[24].mxu1 }
 0x27a   : > { %v1451_v3 = vadd.f32 %v1450_v1, %v2532_v49  ;;  %v1524_v4 = vadd.f32 %v1523_v2, %v2534_v50  ;;  %v1452_v5 = vpop.f32.mrb[25].mxu0  ;;  %v1525_v6 = vpop.f32.mrb[25].mxu1  ;;  %1639 = vst [vmem:[%s2617_s21 + $0x80] sm:$0xff] (%p2248_p6), %v1638_v29  ;;  %1641 = vst [vmem:[%s2617_s21 + $0x88] sm:$0xff] (%p2248_p6), %v1640_v30 }
 0x27b   : > { %v1453_v7 = vadd.f32 %v1452_v5, %v2536_v51  ;;  %v1526_v8 = vadd.f32 %v1525_v6, %v2538_v52  ;;  %v1454_v9 = vpop.f32.mrb[26].mxu0  ;;  %v1527_v10 = vpop.f32.mrb[26].mxu1  ;;  %1603 = sbr.rel (!%p2248_p6) target bundleno = 652 (0x28c), region = 63  ;;  %1643 = vst [vmem:[%s2617_s21 + $0x90] sm:$0xff] (%p2248_p6), %v1642_v31  ;;  %1645 = vst [vmem:[%s2617_s21 + $0x98] sm:$0xff] (%p2248_p6), %v1644_v32 }
 0x27c   : > { %v1556_v11 = vmax.f32 %v1451_v3, 0.0  ;;  %v1558_v12 = vmax.f32 %v1524_v4, 0.0  ;;  %v1455_v13 = vadd.f32 %v1454_v9, %v2532_v49  ;;  %v1528_v14 = vadd.f32 %v1527_v10, %v2534_v50  ;;  %v1456_v15 = vpop.f32.mrb[27].mxu0  ;;  %v1529_v16 = vpop.f32.mrb[27].mxu1  ;;  %v1622_v50 = vld [vmem:[%s2550_s15] sm:$0xff] (%p2248_p6)  ;;  %1647 = vst [vmem:[%s2617_s21 + $0xc0] sm:$0xff] (%p2248_p6), %v1646_v33 }
 0x27d   : > { %v1557_v17 = vmax.f32 %v1453_v7, 0.0  ;;  %v1559_v18 = vmax.f32 %v1526_v8, 0.0  ;;  %v1457_v19 = vadd.f32 %v1456_v15, %v2536_v51  ;;  %v1530_v20 = vadd.f32 %v1529_v16, %v2538_v52  ;;  %v1624_v51 = vld [vmem:[%s2550_s15 + $0x8] sm:$0xff] (%p2248_p6)  ;;  %v1626_v52 = vld [vmem:[%s2550_s15 + $0x10] sm:$0xff] (%p2248_p6)  ;;  %1623 = vst [vmem:[%s2617_s21] sm:$0xff] (%p2248_p6), %v1622_v50  ;;  %1649 = vst [vmem:[%s2617_s21 + $0xc8] sm:$0xff] (%p2248_p6), %v1648_v34 }
 0x27e   : > { %1897 = vst [vmem:[%s2550_s15 + $0xc0] sm:$0xff] %v1556_v11  ;;  %1899 = vst [vmem:[%s2550_s15 + $0xd0] sm:$0xff] %v1558_v12  ;;  %v1560_v21 = vmax.f32 %v1455_v13, 0.0  ;;  %v1562_v22 = vmax.f32 %v1528_v14, 0.0  ;;  %v1654_v37 = vld [vmem:[%s2550_s15 + $0x80] sm:$0xff] (%p2248_p6)  ;;  %v1656_v38 = vld [vmem:[%s2550_s15 + $0x88] sm:$0xff] (%p2248_p6) }
 0x27f   : > { %1898 = vst [vmem:[%s2550_s15 + $0xc8] sm:$0xff] %v1557_v17  ;;  %1900 = vst [vmem:[%s2550_s15 + $0xd8] sm:$0xff] %v1559_v18  ;;  %v1561_v49 = vmax.f32 %v1457_v19, 0.0  ;;  %v1563_v23 = vmax.f32 %v1530_v20, 0.0  ;;  %v1658_v39 = vld [vmem:[%s2550_s15 + $0x90] sm:$0xff] (%p2248_p6)  ;;  %v1660_v40 = vld [vmem:[%s2550_s15 + $0x98] sm:$0xff] (%p2248_p6) }
 0x280   : > { %1901 = vst [vmem:[%s2550_s15 + $0xe0] sm:$0xff] %v1560_v21  ;;  %1903 = vst [vmem:[%s2550_s15 + $0xf0] sm:$0xff] %v1562_v22  ;;  %v1662_v41 = vld [vmem:[%s2550_s15 + $0xa0] sm:$0xff] (%p2248_p6)  ;;  %v1664_v42 = vld [vmem:[%s2550_s15 + $0xa8] sm:$0xff] (%p2248_p6) }
 0x281   : > { %1902 = vst [vmem:[%s2550_s15 + $0xe8] sm:$0xff] %v1561_v49  ;;  %1904 = vst [vmem:[%s2550_s15 + $0xf8] sm:$0xff] %v1563_v23  ;;  %v1666_v43 = vld [vmem:[%s2550_s15 + $0xb0] sm:$0xff] (%p2248_p6)  ;;  %v1668_v44 = vld [vmem:[%s2550_s15 + $0xb8] sm:$0xff] (%p2248_p6) }
 0x282   : > { %1625 = vst [vmem:[%s2617_s21 + $0x8] sm:$0xff] %v1624_v51  ;;  %1627 = vst [vmem:[%s2617_s21 + $0x10] sm:$0xff] %v1626_v52 }
 0x283   : > { %1651 = vst [vmem:[%s2617_s21 + $0xd0] sm:$0xff] %v1650_v35  ;;  %1653 = vst [vmem:[%s2617_s21 + $0xd8] sm:$0xff] %v1652_v36 }
 0x284   : > { %1655 = vst [vmem:[%s2617_s21 + $0x100] sm:$0xff] %v1654_v37  ;;  %1657 = vst [vmem:[%s2617_s21 + $0x108] sm:$0xff] %v1656_v38 }
 0x285   : > { %1659 = vst [vmem:[%s2617_s21 + $0x110] sm:$0xff] %v1658_v39  ;;  %1661 = vst [vmem:[%s2617_s21 + $0x118] sm:$0xff] %v1660_v40  ;;  %v1670_v45 = vld [vmem:[%s2550_s15 + $0xc0] sm:$0xff]  ;;  %v1674_v47 = vld [vmem:[%s2550_s15 + $0xd0] sm:$0xff] }
 0x286   : > { %1663 = vst [vmem:[%s2617_s21 + $0x140] sm:$0xff] %v1662_v41  ;;  %1665 = vst [vmem:[%s2617_s21 + $0x148] sm:$0xff] %v1664_v42  ;;  %v1672_v46 = vld [vmem:[%s2550_s15 + $0xc8] sm:$0xff]  ;;  %v1676_v48 = vld [vmem:[%s2550_s15 + $0xd8] sm:$0xff] }
 0x287   : > { %1667 = vst [vmem:[%s2617_s21 + $0x150] sm:$0xff] %v1666_v43  ;;  %1669 = vst [vmem:[%s2617_s21 + $0x158] sm:$0xff] %v1668_v44  ;;  %v1678_v53 = vld [vmem:[%s2550_s15 + $0xe0] sm:$0xff]  ;;  %v1682_v55 = vld [vmem:[%s2550_s15 + $0xf0] sm:$0xff] }
 0x288   : > { %1671 = vst [vmem:[%s2617_s21 + $0x180] sm:$0xff] %v1670_v45  ;;  %1673 = vst [vmem:[%s2617_s21 + $0x188] sm:$0xff] %v1672_v46  ;;  %v1680_v54 = vld [vmem:[%s2550_s15 + $0xe8] sm:$0xff]  ;;  %v1684_v56 = vld [vmem:[%s2550_s15 + $0xf8] sm:$0xff] }
 0x289   : > { %1675 = vst [vmem:[%s2617_s21 + $0x190] sm:$0xff] %v1674_v47  ;;  %1677 = vst [vmem:[%s2617_s21 + $0x198] sm:$0xff] %v1676_v48 }
 0x28a   : > { %1679 = vst [vmem:[%s2617_s21 + $0x1c0] sm:$0xff] %v1678_v53  ;;  %1681 = vst [vmem:[%s2617_s21 + $0x1c8] sm:$0xff] %v1680_v54 }
 0x28b   : > { %1683 = vst [vmem:[%s2617_s21 + $0x1d0] sm:$0xff] %v1682_v55  ;;  %1685 = vst [vmem:[%s2617_s21 + $0x1d8] sm:$0xff] %v1684_v56 }
 0x28c PF: > { %s14_s19 = sadd.s32 1, %s2185_s19   ;;  %s2701_s15 = smov %s2173_s16 }
 0x28d   : > { %p11_p12 = scmp.ge.s32.totalorder %s14_s19, 4   ;;  %s2702_s16 = smov %s2253_s25 }
 0x28e   : > { %s2703_s17 = smov %s2181_s18  ;;  %s2704_s18 = smov %s2706_s20 }
 0x28f   :  { %13 = sbr.rel (!%p11_p12) target bundleno = 3 (0x3), region = 127 }

</bundles_post_ra>
